<compile_context>
chip_gen: v7x
topology: tpu7x:2x2x1
jax: 0.10.0
libtpu: 0.0.40
codegen_flags: <defaults>
</compile_context>

<pallas_src>
import functools

import jax
import jax.numpy as jnp
from jax.experimental import pallas as pl
from jax.experimental.pallas import tpu as pltpu


def _layernorm_kernel(x_ref, g_ref, b_ref, o_ref, *, eps, n_feat):
    # x_ref: (TB, F) rows of one batch tile; g_ref/b_ref: (1, F) f32.
    # NOTE: when n_rows % TB != 0 the last block contains Pallas-padded garbage
    # rows; stats are computed strictly per-row (no cross-row coupling) and the
    # out-of-bounds writes are masked by Pallas, so this is benign.
    x = x_ref[...].astype(jnp.float32)

    inv_n = 1.0 / n_feat
    # torch.var default is unbiased (correction=1); n_feat == 1 -> NaN like torch.
    inv_nm1 = (1.0 / (n_feat - 1)) if n_feat > 1 else float("nan")

    mean = jnp.sum(x, axis=-1, keepdims=True) * inv_n          # XLU reduce
    diff = x - mean
    var = jnp.sum(diff * diff, axis=-1, keepdims=True) * inv_nm1
    inv_std = jax.lax.rsqrt(var + eps)                          # EUP

    # Fused scale/shift; (1, F) params broadcast across the TB rows.
    o_ref[...] = (diff * inv_std * g_ref[...] + b_ref[...]).astype(o_ref.dtype)


def _choose_tb(n_rows, feat, x_itemsize):
    """Pick rows-per-block and a matching vmem_limit, generation-aware."""
    try:
        vmem_cap = int(pltpu.get_tpu_info().vmem_capacity_bytes)
    except Exception:  # pragma: no cover - conservative fallback
        vmem_cap = 64 << 20
    # Working-set budget: ~24 MiB on v5e/v6e (128 MiB VMEM), ~16 MiB on v7x
    # (64 MiB per TC), so double-buffered in/out blocks + f32 temporaries fit
    # without spilling.  Raise the scoped limit to cover it.
    budget = min(24 << 20, vmem_cap // 4)
    vmem_limit = int(min(vmem_cap, 2 * budget + (16 << 20)))

    # Per-row bytes: in+out blocks double-buffered (~4 * itemsize) plus a few
    # f32 intermediates (x_f32, diff, scaled result ~ 16 bytes).
    per_row_bytes = feat * (4 * x_itemsize + 16)
    tb = budget // max(per_row_bytes, 1)
    tb = max(8, (tb // 8) * 8)

    if n_rows <= tb:
        # Whole batch fits in one block.  v7x has 2 TensorCores sharing the
        # chip's HBM bandwidth; a single-block grid leaves one TC idle, so
        # split into two row blocks when the batch is large enough to keep
        # each block a legal multiple of 8 rows.
        if n_rows >= 16:
            half = (((n_rows + 1) // 2) + 7) // 8 * 8
            if half < n_rows:
                return int(half), vmem_limit
        # Block equal to the full batch dim is always a legal block shape.
        return int(n_rows), vmem_limit
    return int(tb), vmem_limit


def layernorm(x, gamma, beta, eps: float = 1e-5):
    """Pallas LayerNorm matching the reference PyTorch module's forward."""
    orig_shape = x.shape
    if x.ndim == 2:
        n_rows, feat = x.shape
        x2 = x
    elif x.ndim == 3:
        n_rows, s, d = x.shape
        feat = s * d
        x2 = x.reshape(n_rows, feat)
    else:
        raise ValueError(f"unsupported ndim {x.ndim}")

    g = jnp.asarray(gamma, jnp.float32).reshape(1, feat)
    b = jnp.asarray(beta, jnp.float32).reshape(1, feat)

    tb, vmem_limit = _choose_tb(n_rows, feat, x2.dtype.itemsize)
    grid = (pl.cdiv(n_rows, tb),)

    kernel = functools.partial(_layernorm_kernel, eps=eps, n_feat=feat)

    itemsize = x2.dtype.itemsize
    cost = pl.CostEstimate(
        flops=10 * n_rows * feat,
        transcendentals=n_rows,
        bytes_accessed=2 * n_rows * feat * itemsize + 2 * feat * 4,
    )

    out = pl.pallas_call(
        kernel,
        out_shape=jax.ShapeDtypeStruct((n_rows, feat), x2.dtype),
        grid_spec=pltpu.PrefetchScalarGridSpec(
            num_scalar_prefetch=0,
            grid=grid,
            in_specs=[
                pl.BlockSpec((tb, feat), lambda i: (i, 0)),
                pl.BlockSpec((1, feat), lambda i: (0, 0)),
                pl.BlockSpec((1, feat), lambda i: (0, 0)),
            ],
            out_specs=pl.BlockSpec((tb, feat), lambda i: (i, 0)),
        ),
        compiler_params=pltpu.CompilerParams(
            dimension_semantics=("parallel",),
            vmem_limit_bytes=vmem_limit,
        ),
        cost_estimate=cost,
    )(x2, g, b)

    return out.reshape(orig_shape)


def _reference(x, gamma, beta, eps=1e-5):
    axes = (1,) if x.ndim == 2 else (1, 2)
    xf = x.astype(jnp.float32)
    mean = jnp.mean(xf, axis=axes, keepdims=True)
    n = 1
    for a in axes:
        n *= x.shape[a]
    var = jnp.sum((xf - mean) ** 2, axis=axes, keepdims=True) / (n - 1)
    xhat = (xf - mean) / jnp.sqrt(var + eps)
    return (gamma * xhat + beta).astype(x.dtype)


if __name__ == "__main__":
    key = jax.random.PRNGKey(0)
    k1, k2 = jax.random.split(key)

    # 3D case: (batch=2, seq=8, hidden=32); num_features = (8, 32); F = 256.
    x3 = jax.random.normal(k1, (2, 8, 32), dtype=jnp.float32)
    gamma3 = jnp.ones((8, 32), dtype=jnp.float32)
    beta3 = jnp.zeros((8, 32), dtype=jnp.float32)
    out3 = jax.block_until_ready(layernorm(x3, gamma3, beta3))
    ref3 = _reference(x3, gamma3, beta3)
    assert jnp.allclose(out3, ref3, atol=1e-5, rtol=1e-5)

    # 2D case: (batch=4, hidden=32); num_features = 32; F = 32 (non-128-multiple,
    # handled without any wrapper pad/slice).
    x2 = jax.random.normal(k2, (4, 32), dtype=jnp.float32)
    gamma2 = jnp.ones((32,), dtype=jnp.float32)
    beta2 = jnp.zeros((32,), dtype=jnp.float32)
    out2 = jax.block_until_ready(layernorm(x2, gamma2, beta2))
    ref2 = _reference(x2, gamma2, beta2)
    assert jnp.allclose(out2, ref2, atol=1e-5, rtol=1e-5)

    print("KERNEL_OK")
</pallas_src>

<mosaic_0001>
module attributes {stable_mosaic.version = 11 : i64} {
  func.func @_layernorm_kernel(%arg0: i32, %arg1: memref<2x256xf32, #tpu.memory_space<vmem>>, %arg2: memref<1x256xf32, #tpu.memory_space<vmem>>, %arg3: memref<1x256xf32, #tpu.memory_space<vmem>>, %arg4: memref<2x256xf32, #tpu.memory_space<vmem>>) attributes {dimension_semantics = [#tpu.dimension_semantics<parallel>], iteration_bounds = array<i64: 1>, scalar_prefetch = 0 : i64, scratch_operands = 0 : i64, tpu.core_type = #tpu.core_type<tc>, window_params = [{transform_indices = @transform_0, window_bounds = array<i64: 2, 256>}, {pipeline_mode = #tpu.pipeline_mode<synchronous>, transform_indices = @transform_1, window_bounds = array<i64: 1, 256>}, {pipeline_mode = #tpu.pipeline_mode<synchronous>, transform_indices = @transform_2, window_bounds = array<i64: 1, 256>}, {transform_indices = @transform_3, window_bounds = array<i64: 2, 256>}]} {
    %c0 = arith.constant 0 : index
    %c0_0 = arith.constant 0 : index
    %0 = vector.load %arg1[%c0, %c0_0] : memref<2x256xf32, #tpu.memory_space<vmem>>, vector<2x256xf32>
    %cst = arith.constant dense<0.000000e+00> : vector<2xf32>
    %1 = vector.multi_reduction <add>, %0, %cst [1] : vector<2x256xf32> to vector<2xf32>
    %2 = vector.shape_cast %1 : vector<2xf32> to vector<2x1xf32>
    %cst_1 = arith.constant 3.906250e-03 : f32
    %3 = vector.broadcast %cst_1 : f32 to vector<2x1xf32>
    %4 = arith.mulf %2, %3 : vector<2x1xf32>
    %5 = vector.broadcast %4 : vector<2x1xf32> to vector<2x256xf32>
    %6 = arith.subf %0, %5 : vector<2x256xf32>
    %7 = arith.mulf %6, %6 : vector<2x256xf32>
    %cst_2 = arith.constant dense<0.000000e+00> : vector<2xf32>
    %8 = vector.multi_reduction <add>, %7, %cst_2 [1] : vector<2x256xf32> to vector<2xf32>
    %9 = vector.shape_cast %8 : vector<2xf32> to vector<2x1xf32>
    %cst_3 = arith.constant 0.00392156886 : f32
    %10 = vector.broadcast %cst_3 : f32 to vector<2x1xf32>
    %11 = arith.mulf %9, %10 : vector<2x1xf32>
    %cst_4 = arith.constant 9.99999974E-6 : f32
    %12 = vector.broadcast %cst_4 : f32 to vector<2x1xf32>
    %13 = arith.addf %11, %12 : vector<2x1xf32>
    %14 = math.rsqrt %13 : vector<2x1xf32>
    %15 = vector.broadcast %14 : vector<2x1xf32> to vector<2x256xf32>
    %16 = arith.mulf %6, %15 : vector<2x256xf32>
    %c0_5 = arith.constant 0 : index
    %c0_6 = arith.constant 0 : index
    %17 = vector.load %arg2[%c0_5, %c0_6] : memref<1x256xf32, #tpu.memory_space<vmem>>, vector<1x256xf32>
    %18 = vector.broadcast %17 : vector<1x256xf32> to vector<2x256xf32>
    %19 = arith.mulf %16, %18 : vector<2x256xf32>
    %c0_7 = arith.constant 0 : index
    %c0_8 = arith.constant 0 : index
    %20 = vector.load %arg3[%c0_7, %c0_8] : memref<1x256xf32, #tpu.memory_space<vmem>>, vector<1x256xf32>
    %21 = vector.broadcast %20 : vector<1x256xf32> to vector<2x256xf32>
    %22 = arith.addf %19, %21 : vector<2x256xf32>
    %c0_9 = arith.constant 0 : index
    %c0_10 = arith.constant 0 : index
    %23 = vector.load %arg4[%c0_9, %c0_10] : memref<2x256xf32, #tpu.memory_space<vmem>>, vector<2x256xf32>
    tpu.vector_store %arg4[%c0_9, %c0_10], %22 {strides = array<i32>} : memref<2x256xf32, #tpu.memory_space<vmem>>, vector<2x256xf32>,
    return
  }
  func.func @transform_0(%arg0: i32) -> (i32, i32) {
    %c0_i32 = arith.constant 0 : i32
    %c0_i32_0 = arith.constant 0 : i32
    return %arg0, %c0_i32 : i32, i32
  }
  func.func @transform_1(%arg0: i32) -> (i32, i32) {
    %c0_i32 = arith.constant 0 : i32
    %c0_i32_0 = arith.constant 0 : i32
    %c0_i32_1 = arith.constant 0 : i32
    return %c0_i32, %c0_i32_0 : i32, i32
  }
  func.func @transform_2(%arg0: i32) -> (i32, i32) {
    %c0_i32 = arith.constant 0 : i32
    %c0_i32_0 = arith.constant 0 : i32
    %c0_i32_1 = arith.constant 0 : i32
    return %c0_i32, %c0_i32_0 : i32, i32
  }
  func.func @transform_3(%arg0: i32) -> (i32, i32) {
    %c0_i32 = arith.constant 0 : i32
    %c0_i32_0 = arith.constant 0 : i32
    return %arg0, %c0_i32 : i32, i32
  }
}

</mosaic_0001>

<bundles_post_ra>
// kernel: tpu_custom_call.1
= control target key start
LH: loop header
LB: loop body
LE: loop exit
PB: predicated region body
PF: predicated region fallthrough
CT: control target
= control target key end

     0   :  { %8 = vsyncpa [#allocation3], 0  ;;  %s254_s0 = inlined_call_operand.hbm [shape: f32[2,256], index: 0, kind: input, shape index: {}]   ;;  %s255_s1 = inlined_call_operand.vmem [shape: f32[1,256], index: 1, kind: input, shape index: {}]   ;;  %s256_s2 = inlined_call_operand.vmem [shape: f32[1,256], index: 2, kind: input, shape index: {}]   ;;  %s257_s3 = inlined_call_operand.hbm [shape: f32[2,256], index: 3, kind: output, shape index: {}]  }
   0x1   :  { %9 = vsyncpa [#allocation4], 0  ;;  %s196_s12 = smov [#allocation2]   ;;  %s148_s16 = scalar_lea.hbm %s254_s0, 64 }
   0x2   :  { %s16_s13 = sshll.u32 %s196_s12, 4  ;;  %p149_p0 = scmp.ne.s32.totalorder %s254_s0, %s148_s16  ;;  %s17_s13 = int_to_ptr.vmem [resolvable:$true] %s16_s13 }
   0x3   :  { %p152_p1 = scmp.lt.u32.totalorder %s148_s16, %s254_s0 }
   0x5   :  { %p154_p2 = pnand %p152_p1, %p149_p0 }
   0x7   :  { %157 = shalt.err (!%p154_p2)
}
   0x8   :  { %s158_s21 = scalar_lea.vmem %s17_s13, 64  ;;  %p163_p4 = scmp.lt.s32.totalorder %s17_s13, %s17_s13 }
   0x9   :  { %p159_p3 = scmp.ne.s32.totalorder %s17_s13, %s158_s21  ;;  %p164_p5 = scmp.lt.s32.totalorder %s158_s21, %s158_s21 }
   0xb   :  { %p165_p6 = por %p164_p5, %p163_p4 }
   0xd   :  { %p166_p7 = pnand %p165_p6, %p159_p3 }
   0xf   :  { %169 = shalt.err (!%p166_p7)
}
  0x10   :  { %19 = dma.hbm_to_vmem [thread:$0]  %s254_s0, 64, %s17_s13, [#allocation3]  }
  0x11   :  { %192 = dma.done.wait [#allocation3], 64  }
  0x12   :  { %193 = vsyncadd [#allocation3], 4294967232  ;;  %v32_v0 = vlaneseq  ;;  %v197_v1 = vmov 1983009808   ;;  %v27_v6 = vld [vmem:[#allocation2] sm:$0xf] }
  0x13   :  { %v30_v2 = vunpack.c.l.s4 %v197_v1  ;;  %vm39_vm0 = vcmask 1041408   ;;  %v198_v12 = vmov 269488144   ;;  %v86_v31 = vld [vmem:[%s255_s1] sm:$0x3]  ;;  %s199_s27 = smov [#allocation5]  }
  0x14   :  { %v33_v3 = vshrl.u32 %v32_v0, 7  ;;  %v48_v13 = vunpack.c.l.s4 %v198_v12  ;;  %v106_v32 = vld [vmem:[%s256_s2] sm:$0x3]  ;;  %s133_s28 = sshll.u32 %s199_s27, 4  ;;  %s134_s28 = int_to_ptr.vmem [resolvable:$true] %s133_s28 }
  0x15   :  { %v31_v4 = vunpack.c.0.s8 %v30_v2  ;;  %s170_s1 = scalar_lea.vmem %s134_s28, 64  ;;  %p175_p9 = scmp.lt.s32.totalorder %s134_s28, %s134_s28 }
  0x16   :  { %v49_v14 = vunpack.c.0.s8 %v48_v13  ;;  %v90_v29 = vsub.s32 0, %v33_v3  ;;  %v94_v30 = vsub.s32 1, %v33_v3  ;;  %p171_p8 = scmp.ne.s32.totalorder %s134_s28, %s170_s1  ;;  %p176_p10 = scmp.lt.s32.totalorder %s170_s1, %s170_s1 }
  0x17   :  { %v34_v5 = vsub.s32 %v31_v4, %v33_v3 }
  0x18   :  { %v52_v15 = vsub.s32 %v49_v14, %v33_v3  ;;  %v91_v33 = vrot.slane %v86_v31, %v90_v29  ;;  %v95_v34 = vrot.slane %v86_v31, %v94_v30  ;;  %v111_v35 = vrot.slane %v106_v32, %v90_v29  ;;  %p177_p11 = por %p176_p10, %p175_p9 }
  0x19   :  { %v35_v7 = vrot.slane %v27_v6, %v34_v5  ;;  %v115_v36 = vrot.slane %v106_v32, %v94_v30 }
  0x1a   :  { %v96_v37 = vcombine.low %v91_v33, %v95_v34  ;;  %p178_p12 = pnand %p177_p11, %p171_p8 }
  0x1b   :  { %v36_v8 = vcombine.high %v35_v7, %v35_v7  ;;  %v40_v9 = vsel %vm39_vm0, %v35_v7, 0.0  ;;  %v116_v38 = vcombine.low %v111_v35, %v115_v36 }
  0x1c   :  { %v103_v41 = vrot.slane %v96_v37, %v34_v5 }
  0x1d   :  { %v41_v10 = vsel %vm39_vm0, %v36_v8, 0.0  ;;  %v123_v43 = vrot.slane %v116_v38, %v34_v5 }
  0x1e   :  { %v42_v11 = vadd.f32 %v41_v10, %v40_v9 }
  0x20   :  { %43 = vadd.xlane.f32.xlu0 %v42_v11 }
  0xad   :  { %v44_v16 = vpop.xlane.xlu0 %43 }
  0xae   :  { %v45_v17 = vmul.f32 0.00390625, %v44_v16 }
  0xb0   :  { %v53_v18 = vrot.slane %v45_v17, %v52_v15 }
  0xb2   :  { %v55_v19 = vsub.f32 %v27_v6, %v53_v18 }
  0xb4   :  { %v56_v20 = vmul.f32 %v55_v19, %v55_v19 }
  0xb6   :  { %v64_v21 = vrot.slane %v56_v20, %v34_v5 }
  0xb8   :  { %v65_v22 = vcombine.high %v64_v21, %v64_v21  ;;  %v68_v23 = vsel %vm39_vm0, %v64_v21, 0.0 }
  0xba   :  { %v69_v24 = vsel %vm39_vm0, %v65_v22, 0.0 }
  0xbb   :  { %v70_v25 = vadd.f32 %v69_v24, %v68_v23 }
  0xbd   :  { %71 = vadd.xlane.f32.xlu0 %v70_v25 }
 0x14a   :  { %v72_v26 = vpop.xlane.xlu0 %71 }
 0x14b   :  { %v73_v27 = vmul.f32 0.003921569, %v72_v26 }
 0x14d   :  { %v74_v28 = vadd.f32 1e-05, %v73_v27 }
 0x14f   :  { %146 = vrsqrt.f32 %v74_v28 }
 0x159   :  { %v147_v39 = vpop.eup %146 }
 0x15a   :  { %v83_v40 = vrot.slane %v147_v39, %v52_v15 }
 0x15c   :  { %v85_v42 = vmul.f32 %v83_v40, %v55_v19 }
 0x15e   :  { %v105_v44 = vmul.f32 %v103_v41, %v85_v42 }
 0x160   :  { %v125_v45 = vadd.f32 %v123_v43, %v105_v44 }
 0x162   :  { %126 = vst [vmem:[#allocation5] sm:$0xf] %v125_v45 }
 0x163   :  { %181 = shalt.err (!%p178_p12)
}
 0x164   :  { %s182_s30 = scalar_lea.hbm %s257_s3, 64 }
 0x165   :  { %p183_p13 = scmp.ne.s32.totalorder %s257_s3, %s182_s30  ;;  %p186_p0 = scmp.lt.u32.totalorder %s182_s30, %s257_s3 }
 0x167   :  { %p188_p1 = pnand %p186_p0, %p183_p13 }
 0x169   :  { %191 = shalt.err (!%p188_p1)
}
 0x16a   :  { %136 = dma.vmem_to_hbm [thread:$0]  %s134_s28, 64, %s257_s3, [#allocation4]  }
 0x16b   :  { %194 = dma.done.wait [#allocation4], 64  }
 0x16c   :  { %195 = vsyncadd [#allocation4], 4294967232 }
 0x16d   :  { %140 = vsyncpa [#allocation3], 1 }
 0x16e   :  { %141 = vsyncpa [#allocation4], 1 }

</bundles_post_ra>
